<compile_context>
chip_gen: v7x
topology: tpu7x:2x2x1
jax: 0.10.0
libtpu: 0.0.40
codegen_flags: <defaults>
</compile_context>

<pallas_src>
import jax
import jax.numpy as jnp
from jax.experimental import pallas as pl
from jax.experimental.pallas import tpu as pltpu

IN_FEATURES = 640
OUT_FEATURES = 128
MAX_TILE_M = 2048  # safe on v5e/v6e (128 MiB VMEM) and v7x (64 MiB VMEM)


def _linear_kernel(x_ref, w_ref, b_ref, o_ref):
    # Cast the streamed f32 activation tile to bf16 on the VPU (idle slots in
    # this memory-bound kernel), then one MXU dot with f32 accumulation.
    x_bf16 = x_ref[...].astype(jnp.bfloat16)               # (tile_m, 640)
    acc = jnp.dot(x_bf16, w_ref[...],                       # (640, 128) bf16
                  preferred_element_type=jnp.float32)       # f32 accumulate
    o_ref[...] = (acc + b_ref[...]).astype(o_ref.dtype)     # bias add in f32


def _round_up(x, m):
    return ((x + m - 1) // m) * m


def _choose_tile_m(m, row_align, max_tile_m):
    """Pick a row-tile size for the batch dimension.

    - Tiny batches: a single block equal to M (block == full dim satisfies the
      (8,128) layout rule even when M is not a multiple of row_align).
    - Otherwise: >= 2 grid steps (feeds both v7x TensorCores), each tile a
      multiple of row_align and <= max_tile_m, so ragged-tail waste is at most
      row_align-1 rows and Pallas masks the tail block's writes.
    """
    if m <= max(16, row_align):
        return m
    n_tiles = max(2, -(-m // max_tile_m))       # cdiv
    tile = -(-m // n_tiles)                     # cdiv
    return min(max_tile_m, _round_up(tile, row_align))


def projector_forward(x, w_t, b, *, max_tile_m=MAX_TILE_M):
    """x: [M, 640], w_t: [640, 128] (= W^T), b: [128]  ->  [M, 128] f32.

    Computes y = x @ W^T + b (same math as nn.Linear(640, 128)).
    """
    M, K = x.shape
    K2, N = w_t.shape
    assert K == K2 == IN_FEATURES and N == OUT_FEATURES

    # Sublane-packing quantum for the streamed x dtype (8 rows for f32,
    # 16 for bf16, ...).
    itemsize = jnp.dtype(x.dtype).itemsize
    row_align = max(8, 32 // itemsize)

    tile_m = _choose_tile_m(M, row_align, max_tile_m)
    grid_m = pl.cdiv(M, tile_m)

    # Weight is tiny (160 KiB as bf16) and VMEM-resident: casting it once in
    # the wrapper is negligible and halves its DMA + residency.
    w_bf16 = w_t.astype(jnp.bfloat16)
    b2d = b.reshape(1, N).astype(jnp.float32)

    cost = pl.CostEstimate(
        flops=2 * M * K * N,
        transcendentals=0,
        bytes_accessed=(x.size * itemsize        # activations in (native dtype)
                        + w_bf16.size * 2        # resident bf16 weight
                        + b2d.size * 4           # f32 bias
                        + M * N * 4),            # f32 output
    )

    return pl.pallas_call(
        _linear_kernel,
        out_shape=jax.ShapeDtypeStruct((M, N), jnp.float32),
        grid_spec=pltpu.PrefetchScalarGridSpec(
            num_scalar_prefetch=0,
            grid=(grid_m,),
            in_specs=[
                pl.BlockSpec((tile_m, K), lambda i: (i, 0)),  # streamed x tile
                pl.BlockSpec((K, N), lambda i: (0, 0)),       # resident weight
                pl.BlockSpec((1, N), lambda i: (0, 0)),       # resident bias
            ],
            out_specs=pl.BlockSpec((tile_m, N), lambda i: (i, 0)),
        ),
        compiler_params=pltpu.CompilerParams(
            dimension_semantics=("parallel",),  # v7x: shard row tiles over 2 TCs
        ),
        cost_estimate=cost,
    )(x, w_bf16, b2d)


if __name__ == "__main__":
    key = jax.random.PRNGKey(0)
    kx, kw, kb, kx2 = jax.random.split(key, 4)

    # PyTorch stores weight as [out, in]; keep the transposed [in, out] copy.
    w = jax.random.normal(kw, (OUT_FEATURES, IN_FEATURES), jnp.float32) * 0.02
    b = jax.random.normal(kb, (OUT_FEATURES,), jnp.float32) * 0.02
    w_t = jnp.transpose(w)  # [640, 128]

    def ref_f32(xx):
        return xx @ w_t + b.reshape(1, OUT_FEATURES)

    def ref_bf16(xx):
        # Same bf16-input / f32-accumulate math as the kernel.
        xb = xx.astype(jnp.bfloat16).astype(jnp.float32)
        wb = w_t.astype(jnp.bfloat16).astype(jnp.float32)
        return xb @ wb + b.reshape(1, OUT_FEATURES)

    ok = True

    # Small batch: single-block path (tile == M, M not a multiple of 8).
    batch = 4
    x = jax.random.normal(kx, (batch, IN_FEATURES), jnp.float32)
    out = jax.block_until_ready(projector_forward(x, w_t, b))
    ok &= out.shape == (batch, OUT_FEATURES)
    ok &= bool(jnp.allclose(out, ref_bf16(x), atol=2e-3, rtol=2e-3))
    ok &= bool(jnp.allclose(out, ref_f32(x), atol=3e-2, rtol=3e-2))

    # Ragged mid-size batch: 2 grid steps + masked tail block (no pad/slice).
    batch2 = 300
    x2 = jax.random.normal(kx2, (batch2, IN_FEATURES), jnp.float32)
    out2 = jax.block_until_ready(projector_forward(x2, w_t, b))
    ok &= out2.shape == (batch2, OUT_FEATURES)
    ok &= bool(jnp.allclose(out2, ref_bf16(x2), atol=2e-3, rtol=2e-3))
    ok &= bool(jnp.allclose(out2, ref_f32(x2), atol=3e-2, rtol=3e-2))

    assert ok
    print("KERNEL_OK")
</pallas_src>

<mosaic_0001>
module attributes {stable_mosaic.version = 11 : i64} {
  func.func @_linear_kernel(%arg0: i32, %arg1: memref<4x640xf32, #tpu.memory_space<vmem>>, %arg2: memref<640x128xbf16, #tpu.memory_space<vmem>>, %arg3: memref<1x128xf32, #tpu.memory_space<vmem>>, %arg4: memref<4x128xf32, #tpu.memory_space<vmem>>) attributes {dimension_semantics = [#tpu.dimension_semantics<parallel>], iteration_bounds = array<i64: 1>, scalar_prefetch = 0 : i64, scratch_operands = 0 : i64, tpu.core_type = #tpu.core_type<tc>, window_params = [{transform_indices = @transform_0, window_bounds = array<i64: 4, 640>}, {pipeline_mode = #tpu.pipeline_mode<synchronous>, transform_indices = @transform_1, window_bounds = array<i64: 640, 128>}, {pipeline_mode = #tpu.pipeline_mode<synchronous>, transform_indices = @transform_2, window_bounds = array<i64: 1, 128>}, {transform_indices = @transform_3, window_bounds = array<i64: 4, 128>}]} {
    %c0 = arith.constant 0 : index
    %c0_0 = arith.constant 0 : index
    %0 = vector.load %arg1[%c0, %c0_0] : memref<4x640xf32, #tpu.memory_space<vmem>>, vector<4x640xf32>
    %1 = arith.truncf %0 : vector<4x640xf32> to vector<4x640xbf16>
    %c0_1 = arith.constant 0 : index
    %c0_2 = arith.constant 0 : index
    %2 = vector.load %arg2[%c0_1, %c0_2] : memref<640x128xbf16, #tpu.memory_space<vmem>>, vector<640x128xbf16>
    %cst = arith.constant dense<0.000000e+00> : vector<4x128xf32>
    %3 = tpu.matmul %1, %2, %cst {dimension_numbers = #tpu.dot_dimension_numbers<[1], [0], [0], [1], [0, 0, 1, 1], [], []>} : vector<4x640xbf16>, vector<640x128xbf16>, vector<4x128xf32> -> vector<4x128xf32>
    %c0_3 = arith.constant 0 : index
    %c0_4 = arith.constant 0 : index
    %4 = vector.load %arg3[%c0_3, %c0_4] : memref<1x128xf32, #tpu.memory_space<vmem>>, vector<1x128xf32>
    %5 = vector.broadcast %4 : vector<1x128xf32> to vector<4x128xf32>
    %6 = arith.addf %3, %5 : vector<4x128xf32>
    %c0_5 = arith.constant 0 : index
    %c0_6 = arith.constant 0 : index
    %7 = vector.load %arg4[%c0_5, %c0_6] : memref<4x128xf32, #tpu.memory_space<vmem>>, vector<4x128xf32>
    tpu.vector_store %arg4[%c0_5, %c0_6], %6 {strides = array<i32>} : memref<4x128xf32, #tpu.memory_space<vmem>>, vector<4x128xf32>,
    return
  }
  func.func @transform_0(%arg0: i32) -> (i32, i32) {
    %c0_i32 = arith.constant 0 : i32
    %c0_i32_0 = arith.constant 0 : i32
    return %arg0, %c0_i32 : i32, i32
  }
  func.func @transform_1(%arg0: i32) -> (i32, i32) {
    %c0_i32 = arith.constant 0 : i32
    %c0_i32_0 = arith.constant 0 : i32
    %c0_i32_1 = arith.constant 0 : i32
    return %c0_i32, %c0_i32_0 : i32, i32
  }
  func.func @transform_2(%arg0: i32) -> (i32, i32) {
    %c0_i32 = arith.constant 0 : i32
    %c0_i32_0 = arith.constant 0 : i32
    %c0_i32_1 = arith.constant 0 : i32
    return %c0_i32, %c0_i32_0 : i32, i32
  }
  func.func @transform_3(%arg0: i32) -> (i32, i32) {
    %c0_i32 = arith.constant 0 : i32
    %c0_i32_0 = arith.constant 0 : i32
    return %arg0, %c0_i32 : i32, i32
  }
}

</mosaic_0001>

<bundles_post_ra>
// kernel: tpu_custom_call.1
= control target key start
LH: loop header
LB: loop body
LE: loop exit
PB: predicated region body
PF: predicated region fallthrough
CT: control target
= control target key end

     0   :  { %8 = vsyncpa [#allocation3], 0  ;;  %s828_s0 = inlined_call_operand.hbm [shape: f32[4,640], index: 0, kind: input, shape index: {}]   ;;  %s829_s1 = inlined_call_operand.hbm [shape: bf16[640,128], index: 1, kind: input, shape index: {}]   ;;  %s830_s2 = inlined_call_operand.vmem [shape: f32[1,128], index: 2, kind: input, shape index: {}]   ;;  %s831_s3 = inlined_call_operand.hbm [shape: f32[4,128], index: 3, kind: output, shape index: {}]  }
   0x1   :  { %9 = vsyncpa [#allocation6], 0 }
   0x2   :  { %10 = vsyncpa [#allocation4], 0  ;;  %s755_s12 = smov [#allocation2]   ;;  %s756_s14 = smov [#allocation5]  }
   0x3   :  { %s17_s13 = sshll.u32 %s755_s12, 4  ;;  %s26_s15 = sshll.u32 %s756_s14, 4  ;;  %s18_s13 = int_to_ptr.vmem [resolvable:$true] %s17_s13  ;;  %s782_s15 = int_to_ptr.vmem [resolvable:$true] %s26_s15 }
   0x4   :  { %s683_s18 = scalar_lea.hbm %s828_s0, 320 }
   0x5   :  { %p684_p0 = scmp.ne.s32.totalorder %s828_s0, %s683_s18  ;;  %p687_p1 = scmp.lt.u32.totalorder %s683_s18, %s828_s0 }
   0x7   :  { %p689_p2 = pnand %p687_p1, %p684_p0 }
   0x9   :  { %692 = shalt.err (!%p689_p2)
}
   0xa   :  { %s693_s23 = scalar_lea.vmem %s18_s13, 320  ;;  %p698_p4 = scmp.lt.s32.totalorder %s18_s13, %s18_s13 }
   0xb   :  { %p694_p3 = scmp.ne.s32.totalorder %s18_s13, %s693_s23  ;;  %p699_p5 = scmp.lt.s32.totalorder %s693_s23, %s693_s23 }
   0xd   :  { %p700_p6 = por %p699_p5, %p698_p4 }
   0xf   :  { %p701_p7 = pnand %p700_p6, %p694_p3 }
  0x11   :  { %704 = shalt.err (!%p701_p7)
}
  0x12   :  { %20 = dma.hbm_to_vmem [thread:$0]  %s828_s0, 320, %s18_s13, [#allocation3]  }
  0x13   :  { %s705_s28 = scalar_lea.hbm %s829_s1, 5120 }
  0x14   :  { %p706_p8 = scmp.ne.s32.totalorder %s829_s1, %s705_s28  ;;  %p709_p9 = scmp.lt.u32.totalorder %s705_s28, %s829_s1 }
  0x16   :  { %p711_p10 = pnand %p709_p9, %p706_p8 }
  0x18   :  { %714 = shalt.err (!%p711_p10)
}
  0x19   :  { %s715_s6 = scalar_lea.vmem %s782_s15, 5120  ;;  %p720_p12 = scmp.lt.s32.totalorder %s782_s15, %s782_s15 }
  0x1a   :  { %p716_p11 = scmp.ne.s32.totalorder %s782_s15, %s715_s6  ;;  %p721_p13 = scmp.lt.s32.totalorder %s715_s6, %s715_s6 }
  0x1c   :  { %p722_p0 = por %p721_p13, %p720_p12 }
  0x1e   :  { %p723_p1 = pnand %p722_p0, %p716_p11 }
  0x20   :  { %726 = shalt.err (!%p723_p1)
}
  0x21   :  { %s757_s0 = smov 64   ;;  %s758_s7 = smov 4  }
  0x22   :  { %32 = dma.hbm_to_vmem [thread:$0]  %s829_s1, 5120, %s782_s15, [#allocation6], %s757_s0, %s757_s0, %s758_s7  }
  0x23   :  { %749 = dma.done.wait [#allocation3], 320  }
  0x24   :  { %750 = vsyncadd [#allocation3], 4294966976 }
  0x25   :  { %751 = dma.done.wait [#allocation6], 5120  }
  0x26   :  { %752 = vsyncadd [#allocation6], 4294962176  ;;  %v641_v0 = vld [vmem:[#allocation5 + $0x40] sm:$0xff]   ;;  %v645_v4 = vld [vmem:[#allocation5 + $0x48] sm:$0xff]   ;;  %v759_v34 = vmov 0.0   ;;  %vm760_vm0 = vmmov 0  }
  0x27   :  { %v642_v1 = vld [vmem:[#allocation5] sm:$0xff]   ;;  %561 = vmatprep.subr.bf16.mxu0 %v641_v0  ;;  %v646_v5 = vld [vmem:[#allocation5 + $0x8] sm:$0xff]   ;;  %v649_v8 = vld [vmem:[#allocation5 + $0x50] sm:$0xff]   ;;  %s761_s11 = smov [#allocation7]  }
  0x28   :  { %v643_v2 = vld [vmem:[#allocation5 + $0xc0] sm:$0xff]   ;;  %562 = vmatpush3.bf16.msra.mxu0 %v642_v1  ;;  %v647_v6 = vld [vmem:[#allocation5 + $0xc8] sm:$0xff]   ;;  %v650_v9 = vld [vmem:[#allocation5 + $0x10] sm:$0xff]   ;;  %s510_s12 = sshll.u32 %s761_s11, 4  ;;  %s511_s12 = int_to_ptr.vmem [resolvable:$true] %s510_s12 }
  0x29   :  { %v644_v3 = vld [vmem:[#allocation5 + $0x80] sm:$0xff]   ;;  %583 = vmatprep.subr.bf16.mxu1 %v643_v2  ;;  %563 = vmatprep.subr.bf16.mxu0 %v645_v4  ;;  %v648_v7 = vld [vmem:[#allocation5 + $0x88] sm:$0xff]   ;;  %v651_v10 = vld [vmem:[#allocation5 + $0xd0] sm:$0xff]   ;;  %p732_p3 = scmp.lt.s32.totalorder %s511_s12, %s511_s12 }
  0x2a   :  { %584 = vmatpush3.bf16.msra.mxu1 %v644_v3  ;;  %v652_v11 = vld [vmem:[#allocation5 + $0x90] sm:$0xff]   ;;  %v653_v12 = vld [vmem:[#allocation5 + $0x58] sm:$0xff]   ;;  %v657_v16 = vld [vmem:[#allocation5 + $0x60] sm:$0xff]  }
  0x2b   :  { %585 = vmatprep.subr.bf16.mxu1 %v647_v6  ;;  %v654_v13 = vld [vmem:[#allocation5 + $0x18] sm:$0xff]   ;;  %v658_v17 = vld [vmem:[#allocation5 + $0x20] sm:$0xff]   ;;  %v661_v20 = vld [vmem:[#allocation5 + $0x68] sm:$0xff]  }
  0x2c   :  { %564 = vmatpush3.bf16.msra.mxu0 %v646_v5  ;;  %v655_v14 = vld [vmem:[#allocation5 + $0xd8] sm:$0xff]   ;;  %v659_v18 = vld [vmem:[#allocation5 + $0xe0] sm:$0xff]   ;;  %v662_v21 = vld [vmem:[#allocation5 + $0x28] sm:$0xff]  }
  0x2d   :  { %565 = vmatprep.subr.bf16.mxu0 %v649_v8  ;;  %v656_v15 = vld [vmem:[#allocation5 + $0x98] sm:$0xff]   ;;  %v660_v19 = vld [vmem:[#allocation5 + $0xa0] sm:$0xff]   ;;  %v663_v22 = vld [vmem:[#allocation5 + $0xe8] sm:$0xff]  }
  0x2e   :  { %586 = vmatpush3.bf16.msra.mxu1 %v648_v7  ;;  %v664_v23 = vld [vmem:[#allocation5 + $0xa8] sm:$0xff]   ;;  %v665_v24 = vld [vmem:[#allocation5 + $0x70] sm:$0xff]   ;;  %v669_v28 = vld [vmem:[#allocation5 + $0x78] sm:$0xff]  }
  0x2f   :  { %587 = vmatprep.subr.bf16.mxu1 %v651_v10  ;;  %v666_v25 = vld [vmem:[#allocation5 + $0x30] sm:$0xff]   ;;  %v670_v29 = vld [vmem:[#allocation5 + $0x38] sm:$0xff]   ;;  %v675_v40 = vld [vmem:[#allocation5 + $0x100] sm:$0xff]  }
  0x30   :  { %566 = vmatpush3.bf16.msra.mxu0 %v650_v9  ;;  %v667_v26 = vld [vmem:[#allocation5 + $0xf0] sm:$0xff]   ;;  %v671_v30 = vld [vmem:[#allocation5 + $0xf8] sm:$0xff]   ;;  %v676_v42 = vld [vmem:[#allocation5 + $0x108] sm:$0xff]  }
  0x31   :  { %567 = vmatprep.subr.bf16.mxu0 %v653_v12  ;;  %v668_v27 = vld [vmem:[#allocation5 + $0xb0] sm:$0xff]   ;;  %v673_v33 = vld [vmem:[#allocation5 + $0xb8] sm:$0xff]   ;;  %v679_v45 = vld [vmem:[#allocation5 + $0x120] sm:$0xff]  }
  0x32   :  { %588 = vmatpush3.bf16.msra.mxu1 %v652_v11  ;;  %v42_v31 = vld [vmem:[#allocation2] sm:$0xff]  ;;  %v43_v35 = vld [vmem:[#allocation2 + $0x8] sm:$0xff]  ;;  %v44_v49 = vld [vmem:[#allocation2 + $0x10] sm:$0xf] }
  0x33   :  { %589 = vmatprep.subr.bf16.mxu1 %v655_v14  ;;  %v47_v32 = vcombine.high %v42_v31, %v42_v31  ;;  %v51_v36 = vpack.c.bf16 %v42_v31, %v42_v31  ;;  %v48_v37 = vcombine.high %v43_v35, %v43_v35  ;;  %v53_v39 = vpack.c.bf16 %v43_v35, %v43_v35  ;;  %v677_v43 = vld [vmem:[#allocation5 + $0x110] sm:$0xff]   ;;  %v678_v44 = vld [vmem:[#allocation5 + $0x118] sm:$0xff]   ;;  %v680_v46 = vld [vmem:[#allocation5 + $0x128] sm:$0xff]  }
  0x34   :  { %568 = vmatpush3.bf16.msra.mxu0 %v654_v13  ;;  %v681_v47 = vld [vmem:[#allocation5 + $0x130] sm:$0xff]   ;;  %v682_v48 = vld [vmem:[#allocation5 + $0x138] sm:$0xff]   ;;  %v55_v50 = vpack.c.bf16 %v44_v49, %v44_v49  ;;  %v520_v52 = vld [vmem:[%s830_s2] ss:$0 sm:$0xff]  ;;  %s727_s2 = scalar_lea.vmem %s511_s12, 64 }
  0x35   :  { %569 = vmatprep.subr.bf16.mxu0 %v657_v16  ;;  %v52_v38 = vpack.c.bf16 %v47_v32, %v47_v32  ;;  %v54_v41 = vpack.c.bf16 %v48_v37, %v48_v37  ;;  %p728_p2 = scmp.ne.s32.totalorder %s511_s12, %s727_s2  ;;  %p733_p4 = scmp.lt.s32.totalorder %s727_s2, %s727_s2 }
  0x36   :  { %590 = vmatpush3.bf16.msra.mxu1 %v656_v15 }
  0x37   :  { %591 = vmatprep.subr.bf16.mxu1 %v659_v18  ;;  %415 = vmatprep.mubr.bf16.mxu0 %v52_v38  ;;  %p734_p5 = por %p733_p4, %p732_p3 }
  0x38   :  { %570 = vmatpush3.bf16.msra.mxu0 %v658_v17  ;;  %455 = vmatprep.mubr.bf16.mxu1 %v54_v41 }
  0x39   :  { %571 = vmatprep.subr.bf16.mxu0 %v661_v20  ;;  %p735_p6 = pnand %p734_p5, %p728_p2 }
  0x3a   :  { %592 = vmatpush3.bf16.msra.mxu1 %v660_v19 }
  0x3b   :  { %593 = vmatprep.subr.bf16.mxu1 %v663_v22 }
  0x3c   :  { %572 = vmatpush3.bf16.msra.mxu0 %v662_v21 }
  0x3d   :  { %573 = vmatprep.subr.bf16.mxu0 %v665_v24 }
  0x3e   :  { %594 = vmatpush3.bf16.msra.mxu1 %v664_v23 }
  0x3f   :  { %595 = vmatprep.subr.bf16.mxu1 %v667_v26 }
  0x40   :  { %574 = vmatpush3.bf16.msra.mxu0 %v666_v25 }
  0x41   :  { %575 = vmatprep.subr.bf16.mxu0 %v669_v28 }
  0x42   :  { %596 = vmatpush3.bf16.msra.mxu1 %v668_v27 }
  0x43   :  { %597 = vmatprep.subr.bf16.mxu1 %v671_v30 }
  0x44   :  { %576 = vmatpush3.bf16.msra.mxu0 %v670_v29 }
  0x45   :  { %614 = vmatprep.subr.bf16.mxu0 %v759_v34 }
  0x46   :  { %598 = vmatpush3.bf16.msra.mxu1 %v673_v33 }
  0x47   :  { %416 = vmatmul.mubr.bf16.vlgmr.msra.gmra.mrb[0].mxu0 %v51_v36 }
  0x48   :  { %615 = vmatpush3.bf16.msra.mxu0 %v675_v40  ;;  %630 = vmatprep.mubr.msk.bf16.mxu0 %vm760_vm0, %v759_v34 }
  0x49   :  { %456 = vmatmul.mubr.bf16.vlgmr.msra.gmra.mrb[0].mxu1 %v53_v39  ;;  %616 = vmatprep.subr.bf16.mxu0 %v759_v34 }
  0x4c   :  { %617 = vmatpush3.bf16.msra.mxu0 %v676_v42 }
  0x4d   :  { %618 = vmatprep.subr.bf16.mxu0 %v759_v34 }
  0x50   :  { %619 = vmatpush3.bf16.msra.mxu0 %v677_v43 }
  0x51   :  { %620 = vmatprep.subr.bf16.mxu0 %v759_v34 }
  0x54   :  { %621 = vmatpush3.bf16.msra.mxu0 %v678_v44 }
  0x55   :  { %622 = vmatprep.subr.bf16.mxu0 %v759_v34 }
  0x58   :  { %623 = vmatpush3.bf16.msra.mxu0 %v679_v45 }
  0x59   :  { %624 = vmatprep.subr.bf16.mxu0 %v759_v34 }
  0x5c   :  { %625 = vmatpush3.bf16.msra.mxu0 %v680_v46 }
  0x5d   :  { %626 = vmatprep.subr.bf16.mxu0 %v759_v34 }
  0x60   :  { %627 = vmatpush3.bf16.msra.mxu0 %v681_v47 }
  0x61   :  { %628 = vmatprep.subr.bf16.mxu0 %v759_v34 }
  0x64   :  { %629 = vmatpush3.bf16.msra.mxu0 %v682_v48 }
  0x67   :  { %631 = vmatmul.mubr.bf16.vlgmr.msra.gmra.mrb[4].mxu0 %v55_v50 }
 0x11a   :  { %v577_v51 = vpop.f32.mrb[0].mxu0 }
 0x11b   :  { %v578_v53 = vpop.f32.mrb[1].mxu0 }
 0x11c   :  { %v599_v54 = vpop.f32.mrb[0].mxu1  ;;  %v579_v55 = vadd.f32 %v578_v53, %v577_v51  ;;  %v580_v56 = vpop.f32.mrb[2].mxu0 }
 0x11d   :  { %v600_v57 = vpop.f32.mrb[1].mxu1  ;;  %v581_v58 = vpop.f32.mrb[3].mxu0 }
 0x11e   :  { %v601_v59 = vadd.f32 %v600_v57, %v599_v54  ;;  %v602_v60 = vpop.f32.mrb[2].mxu1  ;;  %v418_v61 = vadd.f32 %v579_v55, %v520_v52 }
 0x11f   :  { %v603_v62 = vpop.f32.mrb[3].mxu1 }
 0x120   :  { %v458_v63 = vadd.f32 %v601_v59, %v418_v61 }
 0x13a   :  { %v497_v0 = vpop.f32.mrb[4].mxu0 }
 0x13b   :  { %v498_v1 = vadd.f32 %v497_v0, %v458_v63  ;;  %v632_v2 = vpop.f32.mrb[5].mxu0 }
 0x13c   :  { %v500_v3 = vpop.f32.mrb[6].mxu0 }
 0x13d   :  { %503 = vst [vmem:[#allocation7] sm:$0xf] %v498_v1  ;;  %v633_v4 = vpop.f32.mrb[7].mxu0 }
 0x13e   :  { %738 = shalt.err (!%p735_p6)
}
 0x13f   :  { %s739_s15 = scalar_lea.hbm %s831_s3, 64 }
 0x140   :  { %p740_p7 = scmp.ne.s32.totalorder %s831_s3, %s739_s15  ;;  %p743_p8 = scmp.lt.u32.totalorder %s739_s15, %s831_s3 }
 0x142   :  { %p745_p9 = pnand %p743_p8, %p740_p7 }
 0x144   :  { %748 = shalt.err (!%p745_p9)
}
 0x145   :  { %513 = dma.vmem_to_hbm [thread:$0]  %s511_s12, 64, %s831_s3, [#allocation4]  }
 0x146   :  { %753 = dma.done.wait [#allocation4], 64  }
 0x147   :  { %754 = vsyncadd [#allocation4], 4294967232 }
 0x148   :  { %517 = vsyncpa [#allocation3], 1 }
 0x149   :  { %518 = vsyncpa [#allocation6], 1 }
 0x14a   :  { %519 = vsyncpa [#allocation4], 1 }

</bundles_post_ra>
